<compile_context>
chip_gen: v7x
topology: tpu7x:2x2x1
jax: 0.10.0
libtpu: 0.0.40
codegen_flags: <defaults>
</compile_context>

<pallas_src>
import jax
import jax.numpy as jnp
from jax.experimental import pallas as pl
from jax.experimental.pallas import tpu as pltpu

_LANE = 128
_FORCE_SPLIT_BYTES = 2 * 1024 * 1024   # only force a megacore split above this


def _round_down(v, m):
    return (v // m) * m


def _chip_config():
    """Return (tile_byte_budget, vmem_limit_bytes, has_bf16_valu)."""
    vmem_bytes = None
    try:
        vmem_bytes = int(pltpu.get_tpu_info().vmem_capacity_bytes)
    except Exception:
        vmem_bytes = None

    has_bf16_valu = False
    try:
        kind = jax.devices()[0].device_kind.lower()
        # v2-v5 (incl. v5e) have no bf16 VALU; v6e/v7x do.
        has_bf16_valu = not any(t in kind for t in ("v2", "v3", "v4", "v5"))
    except Exception:
        has_bf16_valu = False

    if vmem_bytes is None:
        # Unknown part: conservative, fits every generation's scoped VMEM.
        return 4 * 1024 * 1024, 48 * 1024 * 1024, has_bf16_valu
    if vmem_bytes <= 80 * 1024 * 1024:
        # v7x-class: only 64 MiB VMEM/TC but ~2.3x HBM BW -> medium tiles, tight cap.
        return 5 * 1024 * 1024, 40 * 1024 * 1024, has_bf16_valu
    # v5e/v6e-class: 128 MiB VMEM -> larger tiles are free.
    return 6 * 1024 * 1024, 64 * 1024 * 1024, has_bf16_valu


def _bn_affine_kernel(x_ref, scale_ref, shift_ref, o_ref):
    # Pure elementwise streaming affine.  Compute dtype = scale/shift dtype
    # (f32 for f32 inputs or on v5e; bf16 for bf16 inputs on v6e/v7x).
    x = x_ref[...].astype(scale_ref.dtype)
    o_ref[...] = (x * scale_ref[...] + shift_ref[...]).astype(o_ref.dtype)


def _pick_tiles_3d(n, c, hw, itemsize, budget_bytes):
    """Tile sizes for the (N, C, HW) layout; requires hw % 128 == 0."""
    sub = 8 if itemsize >= 4 else 16
    budget_elems = max(budget_bytes // itemsize, sub * _LANE)

    # Lane tile: full HW when it fits (contiguous rows), else a big multiple of 128.
    tl = hw if hw <= budget_elems else max(_LANE, _round_down(budget_elems, _LANE))

    # Channel tile: multiple of `sub`, or full C when C < sub.
    if c >= sub:
        tc = max(sub, min(_round_down(c, sub), _round_down(budget_elems // tl, sub)))
    else:
        tc = c

    # Batch tile fills the remaining budget (batch dim has no layout constraint).
    tb = max(1, min(n, budget_elems // max(tc * tl, 1)))

    # Megacore: guarantee >=2 blocks when there is enough work to share.
    if (n * c * hw * itemsize >= _FORCE_SPLIT_BYTES
            and pl.cdiv(n, tb) * pl.cdiv(c, tc) * pl.cdiv(hw, tl) < 2):
        if n >= 2:
            tb = pl.cdiv(n, 2)                       # unconstrained dim
        elif hw >= 2 * _LANE:
            tl = _LANE * pl.cdiv(hw // _LANE, 2)     # stays a multiple of 128
        elif c >= 2 * sub:
            tc = sub * pl.cdiv(pl.cdiv(c, sub), 2)   # stays a multiple of sub
    return tb, tc, tl


def _pick_tiles_2d(n, f, itemsize, budget_bytes):
    """Tile sizes for the folded (N, C*HW) lane-dense fallback layout."""
    sub = 8 if itemsize >= 4 else 16
    budget_elems = max(budget_bytes // itemsize, sub * _LANE)

    # Lane tile: full row when it fits, else a big multiple of 128.
    tf = f if f <= budget_elems else max(_LANE, _round_down(budget_elems, _LANE))

    # Batch tile sits on the sublane axis here: multiple of `sub` or full N.
    if n >= sub:
        tb = max(sub, min(_round_down(n, sub),
                          _round_down(max(budget_elems // tf, sub), sub)))
    else:
        tb = n

    if (n * f * itemsize >= _FORCE_SPLIT_BYTES
            and pl.cdiv(n, tb) * pl.cdiv(f, tf) < 2):
        if f >= 2 * _LANE:
            tf = _LANE * pl.cdiv(pl.cdiv(f, _LANE), 2)
        elif n >= 2 * sub:
            tb = sub * pl.cdiv(pl.cdiv(n, sub), 2)
    return tb, tf


def static_batch_norm_2d(x, weight, bias, running_mean, running_var, eps=1e-5):
    """Equivalent of StaticBatchNorm2d.forward for NCHW input."""
    N, C, H, W = x.shape
    HW = H * W
    itemsize = x.dtype.itemsize

    budget, vmem_limit, has_bf16_valu = _chip_config()

    # Fold per-channel params in f32 (matches the PyTorch forward exactly):
    #   scale = w * rsqrt(var + eps); shift = b - mean * scale.
    scale = weight.astype(jnp.float32) * jax.lax.rsqrt(
        running_var.astype(jnp.float32) + jnp.float32(eps))
    shift = bias.astype(jnp.float32) - running_mean.astype(jnp.float32) * scale

    # Native bf16 math only for bf16 activations on bf16-VALU chips (v6e/v7x).
    compute_dtype = (jnp.bfloat16
                     if (x.dtype == jnp.bfloat16 and has_bf16_valu)
                     else jnp.float32)
    scale = scale.astype(compute_dtype)
    shift = shift.astype(compute_dtype)

    flops = 2 * N * C * HW
    lane_aligned = (HW % _LANE == 0)

    compiler_params = pltpu.CompilerParams(
        # No reduction anywhere -> every axis "parallel" (megacore sharding).
        dimension_semantics=("parallel",) * (3 if lane_aligned else 2),
        vmem_limit_bytes=vmem_limit,
    )

    if lane_aligned:
        # (N, C, HW) layout: per-channel params stay tiny (C, 1) blocks.
        x3 = x.reshape(N, C, HW)
        scale_b = scale.reshape(C, 1)
        shift_b = shift.reshape(C, 1)
        tb, tc, tl = _pick_tiles_3d(N, C, HW, itemsize, budget)
        grid = (pl.cdiv(N, tb), pl.cdiv(C, tc), pl.cdiv(HW, tl))
        param_bytes = 2 * C * scale_b.dtype.itemsize
        out = pl.pallas_call(
            _bn_affine_kernel,
            out_shape=jax.ShapeDtypeStruct((N, C, HW), x.dtype),
            grid=grid,
            in_specs=[
                pl.BlockSpec((tb, tc, tl), lambda b, c, l: (b, c, l)),
                pl.BlockSpec((tc, 1), lambda b, c, l: (c, 0)),   # params ignore batch/lane
                pl.BlockSpec((tc, 1), lambda b, c, l: (c, 0)),
            ],
            out_specs=pl.BlockSpec((tb, tc, tl), lambda b, c, l: (b, c, l)),
            compiler_params=compiler_params,
            cost_estimate=pl.CostEstimate(
                flops=flops, transcendentals=0,
                bytes_accessed=2 * N * C * HW * itemsize + param_bytes),
        )(x3, scale_b, shift_b)
    else:
        # Lane-dense fallback: fold channels into the lane axis so output blocks
        # stay >=128 wide (unmasked vst) even when HW is small / unaligned.
        F = C * HW
        x2 = x.reshape(N, F)
        scale_b = jnp.broadcast_to(scale[:, None], (C, HW)).reshape(1, F)
        shift_b = jnp.broadcast_to(shift[:, None], (C, HW)).reshape(1, F)
        tb, tf = _pick_tiles_2d(N, F, itemsize, budget)
        grid = (pl.cdiv(N, tb), pl.cdiv(F, tf))
        param_bytes = 2 * F * scale_b.dtype.itemsize
        out = pl.pallas_call(
            _bn_affine_kernel,
            out_shape=jax.ShapeDtypeStruct((N, F), x.dtype),
            grid=grid,
            in_specs=[
                pl.BlockSpec((tb, tf), lambda b, l: (b, l)),
                pl.BlockSpec((1, tf), lambda b, l: (0, l)),      # params ignore batch
                pl.BlockSpec((1, tf), lambda b, l: (0, l)),
            ],
            out_specs=pl.BlockSpec((tb, tf), lambda b, l: (b, l)),
            compiler_params=compiler_params,
            cost_estimate=pl.CostEstimate(
                flops=flops, transcendentals=0,
                bytes_accessed=2 * N * F * itemsize + param_bytes),
        )(x2, scale_b, shift_b)

    return out.reshape(N, C, H, W)


if __name__ == "__main__":
    key = jax.random.PRNGKey(0)
    eps = 1e-5

    def run_case(N, C, H, W):
        kx, kw, kb, km, kv = jax.random.split(jax.random.fold_in(key, H * W + C), 5)
        x = jax.random.normal(kx, (N, C, H, W), dtype=jnp.float32)

        # Deterministic "module parameters" perturbed from the __init__ defaults
        # so the test exercises real per-channel broadcasting.
        weight = jnp.ones((C,), jnp.float32) + 0.1 * jax.random.normal(kw, (C,))
        bias = jnp.zeros((C,), jnp.float32) + 0.1 * jax.random.normal(kb, (C,))
        running_mean = 0.1 * jax.random.normal(km, (C,))
        running_var = (jnp.ones((C,), jnp.float32) - eps) + 0.05 * jnp.abs(
            jax.random.normal(kv, (C,)))

        y = static_batch_norm_2d(x, weight, bias, running_mean, running_var, eps)
        y = jax.block_until_ready(y)

        # Pure-JAX reference (mirrors the PyTorch forward exactly).
        scale_ref = weight * jax.lax.rsqrt(running_var + eps)
        shift_ref = bias - running_mean * scale_ref
        y_ref = x * scale_ref.reshape(1, C, 1, 1) + shift_ref.reshape(1, C, 1, 1)

        assert y.shape == (N, C, H, W)
        assert jnp.allclose(y, y_ref, atol=1e-5, rtol=1e-5), \
            f"mismatch vs reference for shape {(N, C, H, W)}"

    run_case(2, 4, 16, 16)   # HW = 256: 128-aligned (N, C, HW) path
    run_case(2, 4, 7, 7)     # HW = 49 : lane-dense folded (N, C*HW) path
    print("KERNEL_OK")
</pallas_src>

<mosaic_0001>
module attributes {stable_mosaic.version = 11 : i64} {
  func.func @_bn_affine_kernel(%arg0: i32, %arg1: i32, %arg2: i32, %arg3: memref<2x4x256xf32, #tpu.memory_space<vmem>>, %arg4: memref<4x1xf32, #tpu.memory_space<vmem>>, %arg5: memref<4x1xf32, #tpu.memory_space<vmem>>, %arg6: memref<2x4x256xf32, #tpu.memory_space<vmem>>) attributes {dimension_semantics = [#tpu.dimension_semantics<parallel>, #tpu.dimension_semantics<parallel>, #tpu.dimension_semantics<parallel>], iteration_bounds = array<i64: 1, 1, 1>, scalar_prefetch = 0 : i64, scratch_operands = 0 : i64, tpu.core_type = #tpu.core_type<tc>, window_params = [{transform_indices = @transform_0, window_bounds = array<i64: 2, 4, 256>}, {transform_indices = @transform_1, window_bounds = array<i64: 4, 1>}, {transform_indices = @transform_2, window_bounds = array<i64: 4, 1>}, {transform_indices = @transform_3, window_bounds = array<i64: 2, 4, 256>}]} {
    %c0 = arith.constant 0 : index
    %c0_0 = arith.constant 0 : index
    %c0_1 = arith.constant 0 : index
    %0 = vector.load %arg3[%c0, %c0_0, %c0_1] : memref<2x4x256xf32, #tpu.memory_space<vmem>>, vector<2x4x256xf32>
    %c0_2 = arith.constant 0 : index
    %c0_3 = arith.constant 0 : index
    %1 = vector.load %arg4[%c0_2, %c0_3] : memref<4x1xf32, #tpu.memory_space<vmem>>, vector<4x1xf32>
    %2 = vector.shape_cast %1 : vector<4x1xf32> to vector<1x4x1xf32>
    %3 = vector.broadcast %2 : vector<1x4x1xf32> to vector<2x4x256xf32>
    %4 = arith.mulf %0, %3 : vector<2x4x256xf32>
    %c0_4 = arith.constant 0 : index
    %c0_5 = arith.constant 0 : index
    %5 = vector.load %arg5[%c0_4, %c0_5] : memref<4x1xf32, #tpu.memory_space<vmem>>, vector<4x1xf32>
    %6 = vector.shape_cast %5 : vector<4x1xf32> to vector<1x4x1xf32>
    %7 = vector.broadcast %6 : vector<1x4x1xf32> to vector<2x4x256xf32>
    %8 = arith.addf %4, %7 : vector<2x4x256xf32>
    %c0_6 = arith.constant 0 : index
    %c0_7 = arith.constant 0 : index
    %c0_8 = arith.constant 0 : index
    %9 = vector.load %arg6[%c0_6, %c0_7, %c0_8] : memref<2x4x256xf32, #tpu.memory_space<vmem>>, vector<2x4x256xf32>
    tpu.vector_store %arg6[%c0_6, %c0_7, %c0_8], %8 {strides = array<i32>} : memref<2x4x256xf32, #tpu.memory_space<vmem>>, vector<2x4x256xf32>,
    return
  }
  func.func @transform_0(%arg0: i32, %arg1: i32, %arg2: i32) -> (i32, i32, i32) {
    %c0_i32 = arith.constant 0 : i32
    return %arg0, %arg1, %arg2 : i32, i32, i32
  }
  func.func @transform_1(%arg0: i32, %arg1: i32, %arg2: i32) -> (i32, i32) {
    %c0_i32 = arith.constant 0 : i32
    %c0_i32_0 = arith.constant 0 : i32
    return %arg1, %c0_i32 : i32, i32
  }
  func.func @transform_2(%arg0: i32, %arg1: i32, %arg2: i32) -> (i32, i32) {
    %c0_i32 = arith.constant 0 : i32
    %c0_i32_0 = arith.constant 0 : i32
    return %arg1, %c0_i32 : i32, i32
  }
  func.func @transform_3(%arg0: i32, %arg1: i32, %arg2: i32) -> (i32, i32, i32) {
    %c0_i32 = arith.constant 0 : i32
    return %arg0, %arg1, %arg2 : i32, i32, i32
  }
}

</mosaic_0001>

<bundles_post_ra>
// kernel: tpu_custom_call.1
= control target key start
LH: loop header
LB: loop body
LE: loop exit
PB: predicated region body
PF: predicated region fallthrough
CT: control target
= control target key end

     0   :  { %8 = vsyncpa [#allocation3], 0  ;;  %s197_s0 = inlined_call_operand.hbm [shape: f32[2,4,256], index: 0, kind: input, shape index: {}]   ;;  %s198_s1 = inlined_call_operand.vmem [shape: f32[4,1], index: 1, kind: input, shape index: {}]   ;;  %s199_s2 = inlined_call_operand.vmem [shape: f32[4,1], index: 2, kind: input, shape index: {}]   ;;  %s200_s3 = inlined_call_operand.hbm [shape: f32[2,4,256], index: 3, kind: output, shape index: {}]  }
   0x1   :  { %9 = vsyncpa [#allocation4], 0  ;;  %s135_s12 = smov [#allocation2]   ;;  %s87_s16 = scalar_lea.hbm %s197_s0, 256 }
   0x2   :  { %s15_s13 = sshll.u32 %s135_s12, 4  ;;  %p88_p0 = scmp.ne.s32.totalorder %s197_s0, %s87_s16  ;;  %s16_s13 = int_to_ptr.vmem [resolvable:$true] %s15_s13 }
   0x3   :  { %p91_p1 = scmp.lt.u32.totalorder %s87_s16, %s197_s0 }
   0x5   :  { %p93_p2 = pnand %p91_p1, %p88_p0 }
   0x7   :  { %96 = shalt.err (!%p93_p2)
}
   0x8   :  { %s97_s21 = scalar_lea.vmem %s16_s13, 256  ;;  %p102_p4 = scmp.lt.s32.totalorder %s16_s13, %s16_s13 }
   0x9   :  { %p98_p3 = scmp.ne.s32.totalorder %s16_s13, %s97_s21  ;;  %p103_p5 = scmp.lt.s32.totalorder %s97_s21, %s97_s21 }
   0xb   :  { %p104_p6 = por %p103_p5, %p102_p4 }
   0xd   :  { %p105_p7 = pnand %p104_p6, %p98_p3 }
   0xf   :  { %108 = shalt.err (!%p105_p7)
}
  0x10   :  { %s136_s22 = smov 128   ;;  %s137_s23 = smov 8  }
  0x11   :  { %21 = dma.hbm_to_vmem [thread:$0]  %s197_s0, 256, %s16_s13, [#allocation3], %s136_s22, %s136_s22, %s137_s23  }
  0x12   :  { %131 = dma.done.wait [#allocation3], 256  }
  0x13   :  { %132 = vsyncadd [#allocation3], 4294967040  ;;  %v138_v0 = vmov 0   ;;  %v31_v1 = vld [vmem:[%s198_s1] sm:$0xf]  ;;  %v39_v5 = vlaneseq  ;;  %v30_v12 = vld [vmem:[#allocation2 + $0x8] sm:$0xff] }
  0x14   :  { %86 = vset.pattern.permute.xlu0 %v138_v0  ;;  %v46_v2 = vld [vmem:[%s199_s2] sm:$0xf]  ;;  %v139_v3 = vmov 839922192   ;;  %s140_s0 = smov [#allocation5]  }
  0x15   :  { %34 = vperm.xlu0 %86, %v31_v1   ;;  %v37_v4 = vunpack.c.l.s4 %v139_v3  ;;  %v40_v7 = vshrl.u32 %v39_v5, 7  ;;  %v29_v11 = vld [vmem:[#allocation2] sm:$0xff]  ;;  %s68_s30 = sshll.u32 %s140_s0, 4  ;;  %s69_s30 = int_to_ptr.vmem [resolvable:$true] %s68_s30 }
  0x16   :  { %s109_s1 = scalar_lea.vmem %s69_s30, 256  ;;  %p114_p9 = scmp.lt.s32.totalorder %s69_s30, %s69_s30 }
  0x17   :  { %v38_v6 = vunpack.c.0.s8 %v37_v4  ;;  %p110_p8 = scmp.ne.s32.totalorder %s69_s30, %s109_s1  ;;  %p115_p10 = scmp.lt.s32.totalorder %s109_s1, %s109_s1 }
  0x19   :  { %49 = vperm.xlu0 %86, %v46_v2   ;;  %v41_v8 = vsub.s32 %v38_v6, %v40_v7  ;;  %p116_p11 = por %p115_p10, %p114_p9 }
  0x1b   :  { %p117_p12 = pnand %p116_p11, %p110_p8 }
  0x94   :  { %v35_v9 = vpop.permute.xlu0 %34 }
  0x95   :  { %v42_v10 = vrot.slane %v35_v9, %v41_v8 }
  0x97   :  { %v44_v14 = vmul.f32 %v42_v10, %v29_v11  ;;  %v45_v15 = vmul.f32 %v42_v10, %v30_v12 }
  0x98   :  { %v50_v13 = vpop.permute.xlu0 %49 }
  0x99   :  { %v57_v16 = vrot.slane %v50_v13, %v41_v8 }
  0x9b   :  { %v59_v17 = vadd.f32 %v57_v16, %v44_v14  ;;  %v60_v18 = vadd.f32 %v57_v16, %v45_v15 }
  0x9d   :  { %61 = vst [vmem:[#allocation5] sm:$0xff] %v59_v17  ;;  %62 = vst [vmem:[#allocation5 + $0x8] sm:$0xff] %v60_v18 }
  0x9e   :  { %120 = shalt.err (!%p117_p12)
}
  0x9f   :  { %s121_s5 = scalar_lea.hbm %s200_s3, 256 }
  0xa0   :  { %p122_p13 = scmp.ne.s32.totalorder %s200_s3, %s121_s5  ;;  %p125_p0 = scmp.lt.u32.totalorder %s121_s5, %s200_s3 }
  0xa2   :  { %p127_p1 = pnand %p125_p0, %p122_p13 }
  0xa4   :  { %130 = shalt.err (!%p127_p1)
}
  0xa5   :  { %74 = dma.vmem_to_hbm [thread:$0]  %s69_s30, 256, %s200_s3, [#allocation4], %s136_s22, %s136_s22, %s137_s23  }
  0xa6   :  { %133 = dma.done.wait [#allocation4], 256  }
  0xa7   :  { %134 = vsyncadd [#allocation4], 4294967040 }
  0xa8   :  { %78 = vsyncpa [#allocation3], 1 }
  0xa9   :  { %79 = vsyncpa [#allocation4], 1 }

</bundles_post_ra>
